<compile_context>
chip_gen: v5e
topology: v5e:2x2
jax: 0.10.0
libtpu: 0.0.40
codegen_flags: <defaults>
</compile_context>

<pallas_src>
import functools
import random

import jax
import jax.numpy as jnp
from jax.experimental import pallas as pl
from jax.experimental.pallas import tpu as pltpu

LANE = 128  # vreg lane width: every feature dim is padded to this


def dynamicnet_kernel(x_ref, w_ref, b_ref, o_ref, *, n_middle):
    """Whole forward pass in one kernel: all operands are single VMEM blocks.

    x_ref: (N, F)      padded input
    w_ref: (3, F, F)   stacked padded weights, already (in, out) layout
    b_ref: (3, F)      stacked padded biases
    o_ref: (N, F)      padded output (caller slices [:, :D_out])
    """
    x = x_ref[...]
    b_all = b_ref[...]                      # one load for all three biases
    n, f = x.shape

    # input_linear + clamp(min=0)
    h = jnp.dot(x, w_ref[0], preferred_element_type=jnp.float32)
    h = jnp.maximum(h + b_all[0:1, :], 0.0)

    # middle_linear reused n_middle times (statically unrolled).
    # Hoist the loop-invariant weight load and bias broadcast out of the loop.
    w2 = w_ref[1]
    b2 = jnp.broadcast_to(b_all[1:2, :], (n, f))
    for _ in range(n_middle):
        h = jnp.dot(h, w2, preferred_element_type=jnp.float32)
        h = jnp.maximum(h + b2, 0.0)

    # output_linear (no activation)
    y = jnp.dot(h, w_ref[2], preferred_element_type=jnp.float32)
    o_ref[...] = (y + b_all[2:3, :]).astype(o_ref.dtype)


def dynamic_net_forward(x, params, n_middle):
    """params = (w1, b1, w2, b2, w3, b3); weights are (in, out), biases (1, out)."""
    w1, b1, w2, b2, w3, b3 = params
    N, D_in = x.shape
    D_out = w3.shape[1]
    F = LANE
    assert max(D_in, w1.shape[1], D_out) <= F, "this kernel assumes dims <= 128"

    def pad_w(w):
        return jnp.pad(w, ((0, F - w.shape[0]), (0, F - w.shape[1])))

    def pad_b(b):
        b = b.reshape(-1)
        return jnp.pad(b, (0, F - b.shape[0]))

    # Stack operands so the kernel takes 3 refs instead of 7 (fewer DMA setups).
    w_stack = jnp.stack([pad_w(w1), pad_w(w2), pad_w(w3)])   # (3, F, F)
    b_stack = jnp.stack([pad_b(b1), pad_b(b2), pad_b(b3)])   # (3, F)
    x_pad = jnp.pad(x, ((0, 0), (0, F - D_in)))              # (N, F)

    kernel = functools.partial(dynamicnet_kernel, n_middle=n_middle)
    # No grid: every array is a single full block resident in VMEM
    # (block_shape == full array shape, so the (8,128) tiling constraint
    # does not apply).  If N grows to hundreds of rows, add a 1-D batch grid
    # with resident-weight BlockSpecs and dimension_semantics=("parallel",).
    y_pad = pl.pallas_call(
        kernel,
        out_shape=jax.ShapeDtypeStruct((N, F), jnp.float32),
        in_specs=[pl.BlockSpec(memory_space=pltpu.MemorySpace.VMEM)] * 3,
        out_specs=pl.BlockSpec(memory_space=pltpu.MemorySpace.VMEM),
    )(x_pad, w_stack, b_stack)

    # Lane-dense store inside the kernel; real output sliced out here.
    return y_pad[:, :D_out]


def init_linear_params(key, fan_in, fan_out):
    """Deterministic init mimicking torch.nn.Linear default (U[-1/sqrt(fan_in), 1/sqrt(fan_in)]).

    Returned weight is (fan_in, fan_out) — already transposed for x @ W.
    """
    kw, kb = jax.random.split(key)
    bound = 1.0 / jnp.sqrt(jnp.float32(fan_in))
    w = jax.random.uniform(kw, (fan_in, fan_out), jnp.float32, -bound, bound)
    b = jax.random.uniform(kb, (1, fan_out), jnp.float32, -bound, bound)
    return w, b


if __name__ == "__main__":
    # Small shapes consistent with x = torch.randn(N, D_in) and Linear(D_in,H)/(H,H)/(H,D_out)
    N, D_in, H, D_out = 8, 32, 64, 16

    key = jax.random.PRNGKey(0)
    kx, k1, k2, k3 = jax.random.split(key, 4)

    x = jax.random.normal(kx, (N, D_in), jnp.float32)
    w1, b1 = init_linear_params(k1, D_in, H)
    w2, b2 = init_linear_params(k2, H, H)
    w3, b3 = init_linear_params(k3, H, D_out)
    params = (w1, b1, w2, b2, w3, b3)

    # Deterministic stand-in for random.randint(0, 3) in the PyTorch forward.
    n_middle = random.Random(0).randint(0, 3)

    y = dynamic_net_forward(x, params, n_middle)
    jax.block_until_ready(y)

    # Pure-JAX reference check of the exact same math.
    h_ref = jnp.maximum(x @ w1 + b1, 0.0)
    for _ in range(n_middle):
        h_ref = jnp.maximum(h_ref @ w2 + b2, 0.0)
    y_ref = h_ref @ w3 + b3
    assert y.shape == (N, D_out)
    assert jnp.allclose(y, y_ref, atol=1e-5, rtol=1e-5)

    print("KERNEL_OK")
</pallas_src>

<mosaic_0001>
module attributes {stable_mosaic.version = 11 : i64} {
  func.func @dynamicnet_kernel(%arg0: memref<8x128xf32, #tpu.memory_space<vmem>>, %arg1: memref<3x128x128xf32, #tpu.memory_space<vmem>>, %arg2: memref<3x128xf32, #tpu.memory_space<vmem>>, %arg3: memref<8x128xf32, #tpu.memory_space<vmem>>) attributes {dimension_semantics = [], scalar_prefetch = 0 : i64, scratch_operands = 0 : i64, tpu.core_type = #tpu.core_type<tc>} {
    %c0 = arith.constant 0 : index
    %c0_0 = arith.constant 0 : index
    %0 = vector.load %arg0[%c0, %c0_0] : memref<8x128xf32, #tpu.memory_space<vmem>>, vector<8x128xf32>
    %c0_1 = arith.constant 0 : index
    %c0_2 = arith.constant 0 : index
    %1 = vector.load %arg2[%c0_1, %c0_2] : memref<3x128xf32, #tpu.memory_space<vmem>>, vector<3x128xf32>
    %c0_3 = arith.constant 0 : index
    %c0_4 = arith.constant 0 : index
    %c0_5 = arith.constant 0 : index
    %2 = vector.load %arg1[%c0_3, %c0_4, %c0_5] : memref<3x128x128xf32, #tpu.memory_space<vmem>>, vector<1x128x128xf32>
    %3 = vector.shape_cast %2 : vector<1x128x128xf32> to vector<128x128xf32>
    %cst = arith.constant dense<0.000000e+00> : vector<8x128xf32>
    %4 = tpu.matmul %0, %3, %cst {dimension_numbers = #tpu.dot_dimension_numbers<[1], [0], [0], [1], [0, 0, 1, 1], [], []>} : vector<8x128xf32>, vector<128x128xf32>, vector<8x128xf32> -> vector<8x128xf32>
    %5 = vector.extract_strided_slice %1 {offsets = [0, 0], sizes = [1, 128], strides = [1, 1]} : vector<3x128xf32> to vector<1x128xf32>
    %6 = vector.broadcast %5 : vector<1x128xf32> to vector<8x128xf32>
    %7 = arith.addf %4, %6 : vector<8x128xf32>
    %cst_6 = arith.constant 0.000000e+00 : f32
    %8 = vector.broadcast %cst_6 : f32 to vector<8x128xf32>
    %9 = arith.maximumf %7, %8 : vector<8x128xf32>
    %c1 = arith.constant 1 : index
    %c0_7 = arith.constant 0 : index
    %c0_8 = arith.constant 0 : index
    %10 = vector.load %arg1[%c1, %c0_7, %c0_8] : memref<3x128x128xf32, #tpu.memory_space<vmem>>, vector<1x128x128xf32>
    %11 = vector.shape_cast %10 : vector<1x128x128xf32> to vector<128x128xf32>
    %12 = vector.extract_strided_slice %1 {offsets = [1, 0], sizes = [1, 128], strides = [1, 1]} : vector<3x128xf32> to vector<1x128xf32>
    %13 = vector.shape_cast %12 : vector<1x128xf32> to vector<1x128xf32>
    %14 = vector.broadcast %13 : vector<1x128xf32> to vector<8x128xf32>
    %cst_9 = arith.constant dense<0.000000e+00> : vector<8x128xf32>
    %15 = tpu.matmul %9, %11, %cst_9 {dimension_numbers = #tpu.dot_dimension_numbers<[1], [0], [0], [1], [0, 0, 1, 1], [], []>} : vector<8x128xf32>, vector<128x128xf32>, vector<8x128xf32> -> vector<8x128xf32>
    %16 = arith.addf %15, %14 : vector<8x128xf32>
    %cst_10 = arith.constant 0.000000e+00 : f32
    %17 = vector.broadcast %cst_10 : f32 to vector<8x128xf32>
    %18 = arith.maximumf %16, %17 : vector<8x128xf32>
    %cst_11 = arith.constant dense<0.000000e+00> : vector<8x128xf32>
    %19 = tpu.matmul %18, %11, %cst_11 {dimension_numbers = #tpu.dot_dimension_numbers<[1], [0], [0], [1], [0, 0, 1, 1], [], []>} : vector<8x128xf32>, vector<128x128xf32>, vector<8x128xf32> -> vector<8x128xf32>
    %20 = arith.addf %19, %14 : vector<8x128xf32>
    %cst_12 = arith.constant 0.000000e+00 : f32
    %21 = vector.broadcast %cst_12 : f32 to vector<8x128xf32>
    %22 = arith.maximumf %20, %21 : vector<8x128xf32>
    %cst_13 = arith.constant dense<0.000000e+00> : vector<8x128xf32>
    %23 = tpu.matmul %22, %11, %cst_13 {dimension_numbers = #tpu.dot_dimension_numbers<[1], [0], [0], [1], [0, 0, 1, 1], [], []>} : vector<8x128xf32>, vector<128x128xf32>, vector<8x128xf32> -> vector<8x128xf32>
    %24 = arith.addf %23, %14 : vector<8x128xf32>
    %cst_14 = arith.constant 0.000000e+00 : f32
    %25 = vector.broadcast %cst_14 : f32 to vector<8x128xf32>
    %26 = arith.maximumf %24, %25 : vector<8x128xf32>
    %c2 = arith.constant 2 : index
    %c0_15 = arith.constant 0 : index
    %c0_16 = arith.constant 0 : index
    %27 = vector.load %arg1[%c2, %c0_15, %c0_16] : memref<3x128x128xf32, #tpu.memory_space<vmem>>, vector<1x128x128xf32>
    %28 = vector.shape_cast %27 : vector<1x128x128xf32> to vector<128x128xf32>
    %cst_17 = arith.constant dense<0.000000e+00> : vector<8x128xf32>
    %29 = tpu.matmul %26, %28, %cst_17 {dimension_numbers = #tpu.dot_dimension_numbers<[1], [0], [0], [1], [0, 0, 1, 1], [], []>} : vector<8x128xf32>, vector<128x128xf32>, vector<8x128xf32> -> vector<8x128xf32>
    %30 = vector.extract_strided_slice %1 {offsets = [2, 0], sizes = [1, 128], strides = [1, 1]} : vector<3x128xf32> to vector<1x128xf32>
    %31 = vector.broadcast %30 : vector<1x128xf32> to vector<8x128xf32>
    %32 = arith.addf %29, %31 : vector<8x128xf32>
    %c0_18 = arith.constant 0 : index
    %c0_19 = arith.constant 0 : index
    %33 = vector.load %arg3[%c0_18, %c0_19] : memref<8x128xf32, #tpu.memory_space<vmem>>, vector<8x128xf32>
    tpu.vector_store %arg3[%c0_18, %c0_19], %32 {strides = array<i32>} : memref<8x128xf32, #tpu.memory_space<vmem>>, vector<8x128xf32>,
    return
  }
}

</mosaic_0001>

<bundles_post_ra>
// kernel: tpu_custom_call.1
= control target key start
LH: loop header
LB: loop body
LE: loop exit
PB: predicated region body
PF: predicated region fallthrough
CT: control target
= control target key end

     0   :  { %8 = vsyncpa [#allocation3], 0  ;;  %s382_s0 = inlined_call_operand.hbm [shape: f32[8,128], index: 0, kind: input, shape index: {}]   ;;  %s383_s1 = inlined_call_operand.hbm [shape: f32[3,128,128], index: 1, kind: input, shape index: {}]   ;;  %s384_s2 = inlined_call_operand.hbm [shape: f32[3,128], index: 2, kind: input, shape index: {}]   ;;  %s385_s3 = inlined_call_operand.hbm [shape: f32[8,128], index: 3, kind: output, shape index: {}]  }
   0x1   :  { %9 = vsyncpa [#allocation6], 0  ;;  %s26_s14 = sshll.u32 %s383_s1, 4  ;;  %s27_s14 = int_to_ptr.hbm [resolvable:$true] %s26_s14 }
   0x2   :  { %10 = vsyncpa [#allocation4], 0  ;;  %s344_s15 = smov [#allocation5]   ;;  %s16_s19 = sshll.u32 %s382_s0, 4  ;;  %s17_s19 = int_to_ptr.hbm [resolvable:$true] %s16_s19 }
   0x3   :  { %s28_s16 = sshll.u32 %s344_s15, 4  ;;  %s345_s20 = smov 128   ;;  %s29_s16 = int_to_ptr.vmem [resolvable:$true] %s28_s16 }
   0x4   :  { %s346_s21 = smov 8   ;;  %s347_s22 = smov [#allocation2]  }
   0x5   :  { %34 = dma.hbm_to_vmem [thread:$0]  %s27_s14, 6144, %s29_s16, [#allocation6], %s345_s20, %s345_s20, %s346_s21  }
   0x6   :  { %s18_s23 = sshll.u32 %s347_s22, 4  ;;  %s40_s26 = sshll.u32 %s384_s2, 4  ;;  %s19_s23 = int_to_ptr.vmem [resolvable:$true] %s18_s23  ;;  %s41_s26 = int_to_ptr.hbm [resolvable:$true] %s40_s26 }
   0x7   :  { %21 = dma.hbm_to_vmem [thread:$0]  %s17_s19, 128, %s19_s23, [#allocation3]  }
   0x8   :  { %s348_s1 = smov [#allocation7]  }
   0x9   :  { %s42_s27 = sshll.u32 %s348_s1, 4  ;;  %s43_s27 = int_to_ptr.vmem [resolvable:$true] %s42_s27 }
   0xa   :  { %45 = dma.hbm_to_vmem [thread:$0]  %s41_s26, 64, %s43_s27, [#allocation6]  }
   0xb   :  { %338 = dma.done.wait [#allocation3], 128  }
   0xc   :  { %339 = vsyncadd [#allocation3], 4294967168 }
   0xd   :  { %340 = dma.done.wait [#allocation6], 6208  }
   0xe   :  { %341 = vsyncadd [#allocation6], 4294961088  ;;  %v75_v0 = vld [vmem:[#allocation5 + $0x78] sm:$0xff]  ;;  %v74_v1 = vld [vmem:[#allocation5 + $0x70] sm:$0xff]  ;;  %s349_s0 = smov [#allocation8]   ;;  %s225_s30 = sshll.u32 %s385_s3, 4  ;;  %s226_s30 = int_to_ptr.hbm [resolvable:$true] %s225_s30 }
   0xf   :  { %77 = vmatpush.msra.mxu0 %v75_v0  ;;  %v73_v2 = vld [vmem:[#allocation5 + $0x68] sm:$0xff]  ;;  %v72_v3 = vld [vmem:[#allocation5 + $0x60] sm:$0xff]  ;;  %v114_v4 = vld [vmem:[#allocation5 + $0xf8] sm:$0xff]  ;;  %s223_s2 = sshll.u32 %s349_s0, 4  ;;  %s224_s2 = int_to_ptr.vmem [resolvable:$true] %s223_s2 }
  0x10   :  { %v71_v5 = vld [vmem:[#allocation5 + $0x58] sm:$0xff]  ;;  %116 = vmatpush.msra.mxu1 %v114_v4  ;;  %v113_v6 = vld [vmem:[#allocation5 + $0xf0] sm:$0xff]  ;;  %137 = vmatpush.msra.mxu2 %v114_v4  ;;  %v112_v7 = vld [vmem:[#allocation5 + $0xe8] sm:$0xff] }
  0x11   :  { %78 = vmatpush.msra.mxu0 %v74_v1  ;;  %158 = vmatpush.msra.mxu3 %v114_v4  ;;  %v70_v8 = vld [vmem:[#allocation5 + $0x50] sm:$0xff]  ;;  %v111_v9 = vld [vmem:[#allocation5 + $0xe0] sm:$0xff]  ;;  %v69_v10 = vld [vmem:[#allocation5 + $0x48] sm:$0xff] }
  0x12   :  { %117 = vmatpush.msra.mxu1 %v113_v6  ;;  %138 = vmatpush.msra.mxu2 %v113_v6  ;;  %v110_v11 = vld [vmem:[#allocation5 + $0xd8] sm:$0xff]  ;;  %v68_v12 = vld [vmem:[#allocation5 + $0x40] sm:$0xff]  ;;  %v109_v13 = vld [vmem:[#allocation5 + $0xd0] sm:$0xff] }
  0x13   :  { %79 = vmatpush.msra.mxu0 %v73_v2  ;;  %159 = vmatpush.msra.mxu3 %v113_v6  ;;  %v67_v14 = vld [vmem:[#allocation5 + $0x38] sm:$0xff]  ;;  %v108_v15 = vld [vmem:[#allocation5 + $0xc8] sm:$0xff]  ;;  %v66_v16 = vld [vmem:[#allocation5 + $0x30] sm:$0xff] }
  0x14   :  { %118 = vmatpush.msra.mxu1 %v112_v7  ;;  %139 = vmatpush.msra.mxu2 %v112_v7  ;;  %v107_v17 = vld [vmem:[#allocation5 + $0xc0] sm:$0xff]  ;;  %v65_v18 = vld [vmem:[#allocation5 + $0x28] sm:$0xff]  ;;  %v106_v19 = vld [vmem:[#allocation5 + $0xb8] sm:$0xff] }
  0x15   :  { %80 = vmatpush.msra.mxu0 %v72_v3  ;;  %160 = vmatpush.msra.mxu3 %v112_v7  ;;  %v64_v20 = vld [vmem:[#allocation5 + $0x20] sm:$0xff]  ;;  %v105_v21 = vld [vmem:[#allocation5 + $0xb0] sm:$0xff]  ;;  %v63_v22 = vld [vmem:[#allocation5 + $0x18] sm:$0xff] }
  0x16   :  { %119 = vmatpush.msra.mxu1 %v111_v9  ;;  %140 = vmatpush.msra.mxu2 %v111_v9  ;;  %v104_v23 = vld [vmem:[#allocation5 + $0xa8] sm:$0xff]  ;;  %v62_v24 = vld [vmem:[#allocation5 + $0x10] sm:$0xff]  ;;  %v103_v25 = vld [vmem:[#allocation5 + $0xa0] sm:$0xff] }
  0x17   :  { %81 = vmatpush.msra.mxu0 %v71_v5  ;;  %161 = vmatpush.msra.mxu3 %v111_v9  ;;  %v61_v26 = vld [vmem:[#allocation5 + $0x8] sm:$0xff]  ;;  %v102_v27 = vld [vmem:[#allocation5 + $0x98] sm:$0xff]  ;;  %v60_v28 = vld [vmem:[#allocation5] sm:$0xff] }
  0x18   :  { %120 = vmatpush.msra.mxu1 %v110_v11  ;;  %141 = vmatpush.msra.mxu2 %v110_v11  ;;  %v58_v29 = vld [vmem:[#allocation2] sm:$0xff]  ;;  %v101_v30 = vld [vmem:[#allocation5 + $0x90] sm:$0xff]  ;;  %v100_v31 = vld [vmem:[#allocation5 + $0x88] sm:$0xff] }
  0x19   :  { %82 = vmatpush.msra.mxu0 %v70_v8  ;;  %162 = vmatpush.msra.mxu3 %v110_v11  ;;  %v99_v32 = vld [vmem:[#allocation5 + $0x80] sm:$0xff]  ;;  %v195_v42 = vld [vmem:[#allocation5 + $0x178] sm:$0xff]  ;;  %v194_v43 = vld [vmem:[#allocation5 + $0x170] sm:$0xff] }
  0x1a   :  { %121 = vmatpush.msra.mxu1 %v109_v13  ;;  %142 = vmatpush.msra.mxu2 %v109_v13  ;;  %v59_v33 = vld [vmem:[#allocation7] sm:$0x7]  ;;  %v193_v44 = vld [vmem:[#allocation5 + $0x168] sm:$0xff]  ;;  %v191_v46 = vld [vmem:[#allocation5 + $0x158] sm:$0xff] }
  0x1b   :  { %83 = vmatpush.msra.mxu0 %v69_v10  ;;  %163 = vmatpush.msra.mxu3 %v109_v13  ;;  %v76_v34 = vperm.slane %v59_v33, 0  ;;  %v115_v38 = vperm.slane %v59_v33, 1  ;;  %v192_v45 = vld [vmem:[#allocation5 + $0x160] sm:$0xff]  ;;  %v190_v47 = vld [vmem:[#allocation5 + $0x150] sm:$0xff]  ;;  %v189_v48 = vld [vmem:[#allocation5 + $0x148] sm:$0xff]  ;;  %v196_v0 = vperm.slane %v59_v33, 2 }
  0x1c   :  { %122 = vmatpush.msra.mxu1 %v108_v15  ;;  %143 = vmatpush.msra.mxu2 %v108_v15  ;;  %v188_v49 = vld [vmem:[#allocation5 + $0x140] sm:$0xff]  ;;  %v187_v50 = vld [vmem:[#allocation5 + $0x138] sm:$0xff]  ;;  %v186_v51 = vld [vmem:[#allocation5 + $0x130] sm:$0xff] }
  0x1d   :  { %84 = vmatpush.msra.mxu0 %v68_v12  ;;  %164 = vmatpush.msra.mxu3 %v108_v15  ;;  %v185_v52 = vld [vmem:[#allocation5 + $0x128] sm:$0xff]  ;;  %v184_v53 = vld [vmem:[#allocation5 + $0x120] sm:$0xff]  ;;  %v183_v54 = vld [vmem:[#allocation5 + $0x118] sm:$0xff] }
  0x1e   :  { %123 = vmatpush.msra.mxu1 %v107_v17  ;;  %144 = vmatpush.msra.mxu2 %v107_v17  ;;  %v182_v58 = vld [vmem:[#allocation5 + $0x110] sm:$0xff]  ;;  %v181_v59 = vld [vmem:[#allocation5 + $0x108] sm:$0xff]  ;;  %v180_v60 = vld [vmem:[#allocation5 + $0x100] sm:$0xff] }
  0x1f   :  { %85 = vmatpush.msra.mxu0 %v67_v14  ;;  %165 = vmatpush.msra.mxu3 %v107_v17 }
  0x20   :  { %124 = vmatpush.msra.mxu1 %v106_v19  ;;  %145 = vmatpush.msra.mxu2 %v106_v19 }
  0x21   :  { %86 = vmatpush.msra.mxu0 %v66_v16  ;;  %166 = vmatpush.msra.mxu3 %v106_v19 }
  0x22   :  { %125 = vmatpush.msra.mxu1 %v105_v21  ;;  %146 = vmatpush.msra.mxu2 %v105_v21 }
  0x23   :  { %87 = vmatpush.msra.mxu0 %v65_v18  ;;  %167 = vmatpush.msra.mxu3 %v105_v21 }
  0x24   :  { %126 = vmatpush.msra.mxu1 %v104_v23  ;;  %147 = vmatpush.msra.mxu2 %v104_v23 }
  0x25   :  { %88 = vmatpush.msra.mxu0 %v64_v20  ;;  %168 = vmatpush.msra.mxu3 %v104_v23 }
  0x26   :  { %127 = vmatpush.msra.mxu1 %v103_v25  ;;  %148 = vmatpush.msra.mxu2 %v103_v25 }
  0x27   :  { %89 = vmatpush.msra.mxu0 %v63_v22  ;;  %169 = vmatpush.msra.mxu3 %v103_v25 }
  0x28   :  { %128 = vmatpush.msra.mxu1 %v102_v27  ;;  %149 = vmatpush.msra.mxu2 %v102_v27 }
  0x29   :  { %90 = vmatpush.msra.mxu0 %v62_v24  ;;  %170 = vmatpush.msra.mxu3 %v102_v27 }
  0x2a   :  { %129 = vmatpush.msra.mxu1 %v101_v30  ;;  %150 = vmatpush.msra.mxu2 %v101_v30 }
  0x2b   :  { %91 = vmatpush.msra.mxu0 %v61_v26  ;;  %171 = vmatpush.msra.mxu3 %v101_v30 }
  0x2c   :  { %130 = vmatpush.msra.mxu1 %v100_v31  ;;  %151 = vmatpush.msra.mxu2 %v100_v31 }
  0x2d   :  { %92 = vmatpush.msra.mxu0 %v60_v28  ;;  %172 = vmatpush.msra.mxu3 %v100_v31 }
  0x2e   :  { %93 = vmatmul.f32.vlgmr.msra.gmra.mxu0 %v58_v29  ;;  %131 = vmatpush.msra.mxu1 %v99_v32 }
  0x2f   :  { %152 = vmatpush.msra.mxu2 %v99_v32  ;;  %173 = vmatpush.msra.mxu3 %v99_v32 }
  0x30   :  { %197 = vmatpush.msrb.mxu0 %v195_v42 }
  0x32   :  { %198 = vmatpush.msrb.mxu0 %v194_v43 }
  0x34   :  { %199 = vmatpush.msrb.mxu0 %v193_v44 }
  0x36   :  { %200 = vmatpush.msrb.mxu0 %v192_v45 }
  0x38   :  { %201 = vmatpush.msrb.mxu0 %v191_v46 }
  0x3a   :  { %202 = vmatpush.msrb.mxu0 %v190_v47 }
  0x3c   :  { %203 = vmatpush.msrb.mxu0 %v189_v48 }
  0x3e   :  { %204 = vmatpush.msrb.mxu0 %v188_v49 }
  0x40   :  { %205 = vmatpush.msrb.mxu0 %v187_v50 }
  0x42   :  { %206 = vmatpush.msrb.mxu0 %v186_v51 }
  0x44   :  { %207 = vmatpush.msrb.mxu0 %v185_v52 }
  0x46   :  { %208 = vmatpush.msrb.mxu0 %v184_v53 }
  0x48   :  { %209 = vmatpush.msrb.mxu0 %v183_v54 }
  0x4a   :  { %210 = vmatpush.msrb.mxu0 %v182_v58 }
  0x4c   :  { %211 = vmatpush.msrb.mxu0 %v181_v59 }
  0x4e   :  { %212 = vmatpush.msrb.mxu0 %v180_v60 }
  0xab   :  { %v94_v35 = vpop.f32.mrf.mxu0 }
  0xac   :  { %v95_v36 = vadd.f32 %v94_v35, %v76_v34 }
  0xae   :  { %v97_v37 = vmax.f32 %v95_v36, 0.0 }
  0xb0   :  { %132 = vmatmul.f32.vlgmr.msra.gmra.mxu1 %v97_v37 }
 0x12d   :  { %v133_v39 = vpop.f32.mrf.mxu1 }
 0x12e   :  { %v134_v40 = vadd.f32 %v133_v39, %v115_v38 }
 0x130   :  { %v136_v41 = vmax.f32 %v134_v40, 0.0 }
 0x132   :  { %153 = vmatmul.f32.vlgmr.msra.gmra.mxu2 %v136_v41 }
 0x1b5   :  { %v154_v55 = vpop.f32.mrf.mxu2 }
 0x1b6   :  { %v155_v56 = vadd.f32 %v154_v55, %v115_v38 }
 0x1b8   :  { %v157_v57 = vmax.f32 %v155_v56, 0.0 }
 0x1ba   :  { %174 = vmatmul.f32.vlgmr.msra.gmra.mxu3 %v157_v57 }
 0x23d   :  { %v175_v61 = vpop.f32.mrf.mxu3 }
 0x23e   :  { %v176_v62 = vadd.f32 %v175_v61, %v115_v38 }
 0x240   :  { %v178_v63 = vmax.f32 %v176_v62, 0.0 }
 0x242   :  { %213 = vmatmul.f32.vlgmr.msrb.gmra.mxu0 %v178_v63 }
 0x2bf   :  { %v214_v1 = vpop.f32.mrf.mxu0 }
 0x2c0   :  { %v215_v2 = vadd.f32 %v214_v1, %v196_v0 }
 0x2c2   :  { %217 = vst [vmem:[#allocation8] sm:$0xff] %v215_v2 }
 0x2c3   :  { %228 = dma.vmem_to_hbm [thread:$0]  %s224_s2, 128, %s226_s30, [#allocation4]  }
 0x2c4   :  { %342 = dma.done.wait [#allocation4], 128  }
 0x2c5   :  { %343 = vsyncadd [#allocation4], 4294967168 }
 0x2c6   :  { %233 = vsyncpa [#allocation3], 1 }
 0x2c7   :  { %234 = vsyncpa [#allocation6], 1 }
 0x2c8   :  { %235 = vsyncpa [#allocation4], 1 }

</bundles_post_ra>
